<compile_context>
chip_gen: v7x
topology: tpu7x:2x2x1
jax: 0.10.0
libtpu: 0.0.40
codegen_flags: <defaults>
</compile_context>

<pallas_src>
import functools

import numpy as np
import jax
import jax.numpy as jnp
from jax.experimental import pallas as pl
from jax.experimental.pallas import tpu as pltpu

KSIZE = 8  # the module hard-codes an 8x8 ones conv filter / unfold / fold

# -----------------------------------------------------------------------------
# pltpu.roll direction probe: the kernel only needs "circular shift by a static
# amount"; probe the rotate convention once on-device and bake the sign into
# the static shifts.  sign=+1: pltpu.roll == jnp.roll; -1: opposite direction;
# 0: pltpu.roll unusable -> guaranteed-semantics slice+concat fallback.
# -----------------------------------------------------------------------------
_ROLL_SIGN = None


def _probe_roll_sign():
    def k(x_ref, o_ref):
        o_ref[...] = pltpu.roll(x_ref[...], 1, 1)

    try:
        x = jax.lax.broadcasted_iota(jnp.float32, (8, 128), 1)
        out = pl.pallas_call(
            k, out_shape=jax.ShapeDtypeStruct((8, 128), jnp.float32))(x)
        v = float(jax.device_get(out)[0, 0])
        if v == 127.0:
            return 1            # jnp.roll convention: out[0] = in[-1]
        if v == 1.0:
            return -1           # opposite convention: out[0] = in[1]
    except Exception:           # pragma: no cover - safety net only
        pass
    return 0


def _roll_sign():
    global _ROLL_SIGN
    if _ROLL_SIGN is None:
        _ROLL_SIGN = _probe_roll_sign()
    return _ROLL_SIGN


def _cshift(x, delta, axis, *, sign):
    """Circular shift of a 2-D array: result[i] = x[(i + delta) % n] along axis."""
    n = x.shape[axis]
    d = delta % n
    if d == 0:
        return x
    if sign != 0:
        # Rotation stays in aligned vregs and uses the XLU slot (free vs VALU).
        return pltpu.roll(x, (-sign * delta) % n, axis)
    # Fallback: guaranteed-semantics circular shift via slice + concat.
    if axis == 0:
        return jnp.concatenate([x[d:, :], x[:d, :]], axis=0)
    return jnp.concatenate([x[:, d:], x[:, :d]], axis=1)


def _dynamic_unfolding_kernel(x_ref, cnt_ref, o_ref, *, ta, h, w, roll_sign):
    hp, wp = h - KSIZE + 1, w - KSIZE + 1
    rows = ta * h
    shift = functools.partial(_cshift, sign=roll_sign)

    # ---- channel mean + exp (elementwise hot path) ----
    sm = jnp.exp(jnp.mean(x_ref[...], axis=1))            # (ta, h, w)
    smf = sm.reshape(rows, w)                              # batch rows -> sublanes

    # ---- sc: 8x8 "down-right" box sum, log-doubling (3 + 3 shifted adds) ----
    # sc[y, x] = sum_{0<=dy,dx<8} smf[y+dy, x+dx] (circular).  Only positions
    # with y < hp, x < wp inside each image are ever divided into (cnt is zero
    # elsewhere), and there the window never wraps, so the value is exact.
    s = smf + shift(smf, 1, 1)
    s = s + shift(s, 2, 1)
    s = s + shift(s, 4, 1)
    s = s + shift(s, 1, 0)
    s = s + shift(s, 2, 0)
    sc = s + shift(s, 4, 0)                                # > 0 everywhere

    # ---- per-window scale, zero-embedded at full (h, w) resolution ----
    cnt = cnt_ref[...]                                     # (ta, hp, wp)
    cnt = jnp.concatenate(
        [cnt, jnp.zeros((ta, hp, KSIZE - 1), jnp.float32)], axis=2)
    cnt = jnp.concatenate(
        [cnt, jnp.zeros((ta, KSIZE - 1, w), jnp.float32)], axis=1)
    # Exact divide keeps reference numerics (approx reciprocal misses 1e-4).
    t = cnt.reshape(rows, w) / sc                          # 0 outside window grid

    # ---- fold == full correlation with ones(8,8): "up-left" box sum ----
    # acc[y, x] = sum_{0<=dy,dx<8} t[y-dy, x-dx]; every wrapped-in row/column
    # is the zero-embedded region of t, so the circular shifts are exact.
    u = t + shift(t, -1, 1)
    u = u + shift(u, -2, 1)
    u = u + shift(u, -4, 1)
    u = u + shift(u, -1, 0)
    u = u + shift(u, -2, 0)
    acc = u + shift(u, -4, 0)

    # out[y, x] = sm[y, x] * sum over windows covering (y, x) of t[window]
    o_ref[...] = (smf * acc).reshape(ta, h, w)


def _pick_batch_tile(a, b, h, w):
    """Whole batch in one grid step when it fits VMEM, else one image/step."""
    if a == 1:
        return 1
    if h % 8:
        return 1  # keep the (ta*h, w) batch->sublane flatten layout-trivial
    hp, wp = h - KSIZE + 1, w - KSIZE + 1
    # Rough per-image bytes: double-buffered in/out/count blocks + ~6 f32 temps.
    per_image = 4 * (2 * b * h * w + 2 * h * w + 2 * hp * wp + 6 * h * w)
    return a if a * per_image <= 40 * 1024 * 1024 else 1


def dynamic_unfolding(x, local_count, output_stride=None):
    # output_stride is unused in the PyTorch forward as well.
    a, b, h, w = x.shape
    hp, wp = h - KSIZE + 1, w - KSIZE + 1

    roll_sign = _roll_sign()          # resolve rotate convention before tracing
    ta = _pick_batch_tile(a, b, h, w)

    kernel = functools.partial(
        _dynamic_unfolding_kernel, ta=ta, h=h, w=w, roll_sign=roll_sign)

    return pl.pallas_call(
        kernel,
        out_shape=jax.ShapeDtypeStruct((a, 1, h, w), jnp.float32),
        grid=(a // ta,),
        in_specs=[
            pl.BlockSpec((ta, b, h, w), lambda i: (i, 0, 0, 0)),
            pl.BlockSpec((ta, None, hp, wp), lambda i: (i, 0, 0, 0)),
        ],
        out_specs=pl.BlockSpec((ta, None, h, w), lambda i: (i, 0, 0, 0)),
        compiler_params=pltpu.CompilerParams(
            dimension_semantics=("parallel",),
            # Above the 16/32 MiB v5e/v6e scoped defaults, below v7x's 64 MiB.
            vmem_limit_bytes=48 * 1024 * 1024,
        ),
    )(x, local_count)


def _reference(x, local_count):
    """Direct unfold/divide/fold reference mirroring the PyTorch code (numpy)."""
    x = np.asarray(x, np.float32)
    cnt = np.asarray(local_count, np.float32)
    a, b, h, w = x.shape
    hp, wp = h - KSIZE + 1, w - KSIZE + 1
    sm = np.exp(np.mean(x, axis=1, keepdims=True))          # (a,1,h,w)
    out = np.zeros((a, 1, h, w), np.float32)
    for n in range(a):
        for py in range(hp):
            for px in range(wp):
                win = sm[n, 0, py:py + KSIZE, px:px + KSIZE]
                s = win.sum()
                out[n, 0, py:py + KSIZE, px:px + KSIZE] += \
                    win / s * cnt[n, 0, py, px]
    return out


if __name__ == "__main__":
    key = jax.random.PRNGKey(0)
    kx, kc = jax.random.split(key)

    a, b, h, w = 2, 4, 16, 16
    hp, wp = h - KSIZE + 1, w - KSIZE + 1

    x = jax.random.normal(kx, (a, b, h, w), dtype=jnp.float32)
    # local_count: one scalar per sliding-window position (strictly positive)
    local_count = jax.random.uniform(
        kc, (a, 1, hp, wp), dtype=jnp.float32, minval=1.0, maxval=4.0)

    out = dynamic_unfolding(x, local_count, output_stride=8)
    out = jax.block_until_ready(out)

    ref = _reference(x, local_count)
    np.testing.assert_allclose(np.asarray(out), ref, rtol=1e-4, atol=1e-4)

    print("KERNEL_OK")
</pallas_src>

<mosaic_0001>
module attributes {stable_mosaic.version = 11 : i64} {
  func.func @k(%arg0: memref<8x128xf32, #tpu.memory_space<vmem>>, %arg1: memref<8x128xf32, #tpu.memory_space<vmem>>) attributes {dimension_semantics = [], scalar_prefetch = 0 : i64, scratch_operands = 0 : i64, tpu.core_type = #tpu.core_type<tc>} {
    %c0 = arith.constant 0 : index
    %c0_0 = arith.constant 0 : index
    %0 = vector.load %arg0[%c0, %c0_0] : memref<8x128xf32, #tpu.memory_space<vmem>>, vector<8x128xf32>
    %c1_i32 = arith.constant 1 : i32
    %1 = tpu.dynamic_rotate %0 by %c1_i32 dim 1 : vector<8x128xf32>, i32 -> vector<8x128xf32>
    %c0_1 = arith.constant 0 : index
    %c0_2 = arith.constant 0 : index
    %2 = vector.load %arg1[%c0_1, %c0_2] : memref<8x128xf32, #tpu.memory_space<vmem>>, vector<8x128xf32>
    tpu.vector_store %arg1[%c0_1, %c0_2], %1 {strides = array<i32>} : memref<8x128xf32, #tpu.memory_space<vmem>>, vector<8x128xf32>,
    return
  }
}

module attributes {stable_mosaic.version = 11 : i64} {
  func.func @_dynamic_unfolding_kernel(%arg0: i32, %arg1: memref<2x4x16x16xf32, #tpu.memory_space<vmem>>, %arg2: memref<2x1x9x9xf32, #tpu.memory_space<vmem>>, %arg3: memref<2x1x16x16xf32, #tpu.memory_space<vmem>>) attributes {dimension_semantics = [#tpu.dimension_semantics<parallel>], iteration_bounds = array<i64: 1>, scalar_prefetch = 0 : i64, scratch_operands = 0 : i64, tpu.core_type = #tpu.core_type<tc>, window_params = [{transform_indices = @transform_0, window_bounds = array<i64: 2, 4, 16, 16>}, {transform_indices = @transform_1, window_bounds = array<i64: 2, 1, 9, 9>}, {transform_indices = @transform_2, window_bounds = array<i64: 2, 1, 16, 16>}]} {
    %c0 = arith.constant 0 : index
    %c0_0 = arith.constant 0 : index
    %c0_1 = arith.constant 0 : index
    %c0_2 = arith.constant 0 : index
    %0 = vector.load %arg1[%c0, %c0_0, %c0_1, %c0_2] : memref<2x4x16x16xf32, #tpu.memory_space<vmem>>, vector<2x4x16x16xf32>
    %cst = arith.constant dense<0.000000e+00> : vector<2x16x16xf32>
    %1 = vector.multi_reduction <add>, %0, %cst [1] : vector<2x4x16x16xf32> to vector<2x16x16xf32>
    %cst_3 = arith.constant 4.000000e+00 : f32
    %2 = vector.broadcast %cst_3 : f32 to vector<2x16x16xf32>
    %3 = arith.divf %1, %2 : vector<2x16x16xf32>
    %4 = math.exp %3 : vector<2x16x16xf32>
    %5 = vector.shape_cast %4 : vector<2x16x16xf32> to vector<32x16xf32>
    %6 = vector.extract_strided_slice %5 {offsets = [0, 1], sizes = [32, 15], strides = [1, 1]} : vector<32x16xf32> to vector<32x15xf32>
    %7 = vector.extract_strided_slice %5 {offsets = [0, 0], sizes = [32, 1], strides = [1, 1]} : vector<32x16xf32> to vector<32x1xf32>
    %8 = tpu.concatenate %6, %7 in 1 : vector<32x15xf32>, vector<32x1xf32> -> vector<32x16xf32>
    %9 = arith.addf %5, %8 : vector<32x16xf32>
    %10 = vector.extract_strided_slice %9 {offsets = [0, 2], sizes = [32, 14], strides = [1, 1]} : vector<32x16xf32> to vector<32x14xf32>
    %11 = vector.extract_strided_slice %9 {offsets = [0, 0], sizes = [32, 2], strides = [1, 1]} : vector<32x16xf32> to vector<32x2xf32>
    %12 = tpu.concatenate %10, %11 in 1 : vector<32x14xf32>, vector<32x2xf32> -> vector<32x16xf32>
    %13 = arith.addf %9, %12 : vector<32x16xf32>
    %14 = vector.extract_strided_slice %13 {offsets = [0, 4], sizes = [32, 12], strides = [1, 1]} : vector<32x16xf32> to vector<32x12xf32>
    %15 = vector.extract_strided_slice %13 {offsets = [0, 0], sizes = [32, 4], strides = [1, 1]} : vector<32x16xf32> to vector<32x4xf32>
    %16 = tpu.concatenate %14, %15 in 1 : vector<32x12xf32>, vector<32x4xf32> -> vector<32x16xf32>
    %17 = arith.addf %13, %16 : vector<32x16xf32>
    %18 = vector.extract_strided_slice %17 {offsets = [1, 0], sizes = [31, 16], strides = [1, 1]} : vector<32x16xf32> to vector<31x16xf32>
    %19 = vector.extract_strided_slice %17 {offsets = [0, 0], sizes = [1, 16], strides = [1, 1]} : vector<32x16xf32> to vector<1x16xf32>
    %20 = tpu.concatenate %18, %19 in 0 : vector<31x16xf32>, vector<1x16xf32> -> vector<32x16xf32>
    %21 = arith.addf %17, %20 : vector<32x16xf32>
    %22 = vector.extract_strided_slice %21 {offsets = [2, 0], sizes = [30, 16], strides = [1, 1]} : vector<32x16xf32> to vector<30x16xf32>
    %23 = vector.extract_strided_slice %21 {offsets = [0, 0], sizes = [2, 16], strides = [1, 1]} : vector<32x16xf32> to vector<2x16xf32>
    %24 = tpu.concatenate %22, %23 in 0 : vector<30x16xf32>, vector<2x16xf32> -> vector<32x16xf32>
    %25 = arith.addf %21, %24 : vector<32x16xf32>
    %26 = vector.extract_strided_slice %25 {offsets = [4, 0], sizes = [28, 16], strides = [1, 1]} : vector<32x16xf32> to vector<28x16xf32>
    %27 = vector.extract_strided_slice %25 {offsets = [0, 0], sizes = [4, 16], strides = [1, 1]} : vector<32x16xf32> to vector<4x16xf32>
    %28 = tpu.concatenate %26, %27 in 0 : vector<28x16xf32>, vector<4x16xf32> -> vector<32x16xf32>
    %29 = arith.addf %25, %28 : vector<32x16xf32>
    %c0_4 = arith.constant 0 : index
    %c0_5 = arith.constant 0 : index
    %c0_6 = arith.constant 0 : index
    %c0_7 = arith.constant 0 : index
    %30 = vector.load %arg2[%c0_4, %c0_5, %c0_6, %c0_7] : memref<2x1x9x9xf32, #tpu.memory_space<vmem>>, vector<2x1x9x9xf32>
    %31 = vector.shape_cast %30 : vector<2x1x9x9xf32> to vector<2x9x9xf32>
    %cst_8 = arith.constant 0.000000e+00 : f32
    %32 = vector.broadcast %cst_8 : f32 to vector<2x9x7xf32>
    %33 = tpu.concatenate %31, %32 in 2 : vector<2x9x9xf32>, vector<2x9x7xf32> -> vector<2x9x16xf32>
    %cst_9 = arith.constant 0.000000e+00 : f32
    %34 = vector.broadcast %cst_9 : f32 to vector<2x7x16xf32>
    %35 = tpu.concatenate %33, %34 in 1 : vector<2x9x16xf32>, vector<2x7x16xf32> -> vector<2x16x16xf32>
    %36 = vector.shape_cast %35 : vector<2x16x16xf32> to vector<32x16xf32>
    %37 = arith.divf %36, %29 : vector<32x16xf32>
    %38 = vector.extract_strided_slice %37 {offsets = [0, 15], sizes = [32, 1], strides = [1, 1]} : vector<32x16xf32> to vector<32x1xf32>
    %39 = vector.extract_strided_slice %37 {offsets = [0, 0], sizes = [32, 15], strides = [1, 1]} : vector<32x16xf32> to vector<32x15xf32>
    %40 = tpu.concatenate %38, %39 in 1 : vector<32x1xf32>, vector<32x15xf32> -> vector<32x16xf32>
    %41 = arith.addf %37, %40 : vector<32x16xf32>
    %42 = vector.extract_strided_slice %41 {offsets = [0, 14], sizes = [32, 2], strides = [1, 1]} : vector<32x16xf32> to vector<32x2xf32>
    %43 = vector.extract_strided_slice %41 {offsets = [0, 0], sizes = [32, 14], strides = [1, 1]} : vector<32x16xf32> to vector<32x14xf32>
    %44 = tpu.concatenate %42, %43 in 1 : vector<32x2xf32>, vector<32x14xf32> -> vector<32x16xf32>
    %45 = arith.addf %41, %44 : vector<32x16xf32>
    %46 = vector.extract_strided_slice %45 {offsets = [0, 12], sizes = [32, 4], strides = [1, 1]} : vector<32x16xf32> to vector<32x4xf32>
    %47 = vector.extract_strided_slice %45 {offsets = [0, 0], sizes = [32, 12], strides = [1, 1]} : vector<32x16xf32> to vector<32x12xf32>
    %48 = tpu.concatenate %46, %47 in 1 : vector<32x4xf32>, vector<32x12xf32> -> vector<32x16xf32>
    %49 = arith.addf %45, %48 : vector<32x16xf32>
    %50 = vector.extract_strided_slice %49 {offsets = [31, 0], sizes = [1, 16], strides = [1, 1]} : vector<32x16xf32> to vector<1x16xf32>
    %51 = vector.extract_strided_slice %49 {offsets = [0, 0], sizes = [31, 16], strides = [1, 1]} : vector<32x16xf32> to vector<31x16xf32>
    %52 = tpu.concatenate %50, %51 in 0 : vector<1x16xf32>, vector<31x16xf32> -> vector<32x16xf32>
    %53 = arith.addf %49, %52 : vector<32x16xf32>
    %54 = vector.extract_strided_slice %53 {offsets = [30, 0], sizes = [2, 16], strides = [1, 1]} : vector<32x16xf32> to vector<2x16xf32>
    %55 = vector.extract_strided_slice %53 {offsets = [0, 0], sizes = [30, 16], strides = [1, 1]} : vector<32x16xf32> to vector<30x16xf32>
    %56 = tpu.concatenate %54, %55 in 0 : vector<2x16xf32>, vector<30x16xf32> -> vector<32x16xf32>
    %57 = arith.addf %53, %56 : vector<32x16xf32>
    %58 = vector.extract_strided_slice %57 {offsets = [28, 0], sizes = [4, 16], strides = [1, 1]} : vector<32x16xf32> to vector<4x16xf32>
    %59 = vector.extract_strided_slice %57 {offsets = [0, 0], sizes = [28, 16], strides = [1, 1]} : vector<32x16xf32> to vector<28x16xf32>
    %60 = tpu.concatenate %58, %59 in 0 : vector<4x16xf32>, vector<28x16xf32> -> vector<32x16xf32>
    %61 = arith.addf %57, %60 : vector<32x16xf32>
    %62 = arith.mulf %5, %61 : vector<32x16xf32>
    %63 = vector.shape_cast %62 : vector<32x16xf32> to vector<2x16x16xf32>
    %c0_10 = arith.constant 0 : index
    %c0_11 = arith.constant 0 : index
    %c0_12 = arith.constant 0 : index
    %c0_13 = arith.constant 0 : index
    %64 = vector.load %arg3[%c0_10, %c0_11, %c0_12, %c0_13] : memref<2x1x16x16xf32, #tpu.memory_space<vmem>>, vector<2x1x16x16xf32>
    %65 = vector.shape_cast %64 : vector<2x1x16x16xf32> to vector<2x16x16xf32>
    %66 = vector.shape_cast %63 : vector<2x16x16xf32> to vector<2x1x16x16xf32>
    tpu.vector_store %arg3[%c0_10, %c0_11, %c0_12, %c0_13], %66 {strides = array<i32>} : memref<2x1x16x16xf32, #tpu.memory_space<vmem>>, vector<2x1x16x16xf32>,
    return
  }
  func.func @transform_0(%arg0: i32) -> (i32, i32, i32, i32) {
    %c0_i32 = arith.constant 0 : i32
    %c0_i32_0 = arith.constant 0 : i32
    %c0_i32_1 = arith.constant 0 : i32
    %c0_i32_2 = arith.constant 0 : i32
    return %arg0, %c0_i32, %c0_i32_0, %c0_i32_1 : i32, i32, i32, i32
  }
  func.func @transform_1(%arg0: i32) -> (i32, i32, i32, i32) {
    %c0_i32 = arith.constant 0 : i32
    %c0_i32_0 = arith.constant 0 : i32
    %c0_i32_1 = arith.constant 0 : i32
    %c0_i32_2 = arith.constant 0 : i32
    return %arg0, %c0_i32, %c0_i32_0, %c0_i32_1 : i32, i32, i32, i32
  }
  func.func @transform_2(%arg0: i32) -> (i32, i32, i32, i32) {
    %c0_i32 = arith.constant 0 : i32
    %c0_i32_0 = arith.constant 0 : i32
    %c0_i32_1 = arith.constant 0 : i32
    %c0_i32_2 = arith.constant 0 : i32
    return %arg0, %c0_i32, %c0_i32_0, %c0_i32_1 : i32, i32, i32, i32
  }
}

</mosaic_0001>

<bundles_post_ra>
// kernel: tpu_custom_call.1
= control target key start
LH: loop header
LB: loop body
LE: loop exit
PB: predicated region body
PF: predicated region fallthrough
CT: control target
= control target key end

     0   :  { %6 = vsyncpa [#allocation3], 0  ;;  %s128_s0 = inlined_call_operand.hbm [shape: f32[8,128], index: 0, kind: input, shape index: {}]   ;;  %s129_s1 = inlined_call_operand.hbm [shape: f32[8,128], index: 1, kind: output, shape index: {}]  }
   0x1   :  { %7 = vsyncpa [#allocation4], 0  ;;  %s91_s6 = smov [#allocation2]   ;;  %s43_s10 = scalar_lea.hbm %s128_s0, 128 }
   0x2   :  { %s14_s7 = sshll.u32 %s91_s6, 4  ;;  %p44_p0 = scmp.ne.s32.totalorder %s128_s0, %s43_s10  ;;  %s15_s7 = int_to_ptr.vmem [resolvable:$true] %s14_s7 }
   0x3   :  { %p47_p1 = scmp.lt.u32.totalorder %s43_s10, %s128_s0 }
   0x5   :  { %p49_p2 = pnand %p47_p1, %p44_p0 }
   0x7   :  { %52 = shalt.err (!%p49_p2)
}
   0x8   :  { %s53_s15 = scalar_lea.vmem %s15_s7, 128  ;;  %p58_p4 = scmp.lt.s32.totalorder %s15_s7, %s15_s7 }
   0x9   :  { %p54_p3 = scmp.ne.s32.totalorder %s15_s7, %s53_s15  ;;  %p59_p5 = scmp.lt.s32.totalorder %s53_s15, %s53_s15 }
   0xb   :  { %p60_p6 = por %p59_p5, %p58_p4 }
   0xd   :  { %p61_p7 = pnand %p60_p6, %p54_p3 }
   0xf   :  { %64 = shalt.err (!%p61_p7)
}
  0x10   :  { %17 = dma.hbm_to_vmem [thread:$0]  %s128_s0, 128, %s15_s7, [#allocation3]  }
  0x11   :  { %87 = dma.done.wait [#allocation3], 128  }
  0x12   :  { %88 = vsyncadd [#allocation3], 4294967168  ;;  %v21_v0 = vld [vmem:[#allocation2] sm:$0xff]  ;;  %s92_s18 = smov 1   ;;  %s93_s19 = smov [#allocation5]  }
  0x13   :  { %22 = vrot.lane.b32.xlu0 %v21_v0, %s92_s18  ;;  %s31_s20 = sshll.u32 %s93_s19, 4  ;;  %s32_s20 = int_to_ptr.vmem [resolvable:$true] %s31_s20 }
  0x14   :  { %s65_s21 = scalar_lea.vmem %s32_s20, 128  ;;  %p70_p9 = scmp.lt.s32.totalorder %s32_s20, %s32_s20 }
  0x15   :  { %p66_p8 = scmp.ne.s32.totalorder %s32_s20, %s65_s21  ;;  %p71_p10 = scmp.lt.s32.totalorder %s65_s21, %s65_s21 }
  0x17   :  { %p72_p11 = por %p71_p10, %p70_p9 }
  0x19   :  { %p73_p12 = pnand %p72_p11, %p66_p8 }
  0x85   :  { %v23_v1 = vpop.permute.xlu0 %22 }
  0x86   :  { %24 = vst [vmem:[#allocation5] sm:$0xff] %v23_v1 }
  0x87   :  { %76 = shalt.err (!%p73_p12)
}
  0x88   :  { %s77_s0 = scalar_lea.hbm %s129_s1, 128 }
  0x89   :  { %p78_p13 = scmp.ne.s32.totalorder %s129_s1, %s77_s0  ;;  %p81_p0 = scmp.lt.u32.totalorder %s77_s0, %s129_s1 }
  0x8b   :  { %p83_p1 = pnand %p81_p0, %p78_p13 }
  0x8d   :  { %86 = shalt.err (!%p83_p1)
}
  0x8e   :  { %34 = dma.vmem_to_hbm [thread:$0]  %s32_s20, 128, %s129_s1, [#allocation4]  }
  0x8f   :  { %89 = dma.done.wait [#allocation4], 128  }
  0x90   :  { %90 = vsyncadd [#allocation4], 4294967168 }
  0x91   :  { %38 = vsyncpa [#allocation3], 1 }
  0x92   :  { %39 = vsyncpa [#allocation4], 1 }

// kernel: tpu_custom_call.1
= control target key start
LH: loop header
LB: loop body
LE: loop exit
PB: predicated region body
PF: predicated region fallthrough
CT: control target
= control target key end

     0   :  { %7 = vsyncpa [#allocation3], 0  ;;  %s696_s0 = inlined_call_operand.hbm [shape: f32[2,4,16,16], index: 0, kind: input, shape index: {}]   ;;  %s697_s1 = inlined_call_operand.vmem [shape: f32[2,1,9,9], index: 1, kind: input, shape index: {}]   ;;  %s698_s2 = inlined_call_operand.hbm [shape: f32[2,1,16,16], index: 2, kind: output, shape index: {}]  }
   0x1   :  { %8 = vsyncpa [#allocation4], 0  ;;  %s561_s9 = smov [#allocation2]   ;;  %s513_s13 = scalar_lea.hbm %s696_s0, 2048 }
   0x2   :  { %s14_s10 = sshll.u32 %s561_s9, 4  ;;  %p514_p0 = scmp.ne.s32.totalorder %s696_s0, %s513_s13  ;;  %s15_s10 = int_to_ptr.vmem [resolvable:$true] %s14_s10 }
   0x3   :  { %p517_p1 = scmp.lt.u32.totalorder %s513_s13, %s696_s0 }
   0x5   :  { %p519_p2 = pnand %p517_p1, %p514_p0 }
   0x7   :  { %522 = shalt.err (!%p519_p2)
}
   0x8   :  { %s523_s18 = scalar_lea.vmem %s15_s10, 2048  ;;  %p528_p4 = scmp.lt.s32.totalorder %s15_s10, %s15_s10 }
   0x9   :  { %p524_p3 = scmp.ne.s32.totalorder %s15_s10, %s523_s18  ;;  %p529_p5 = scmp.lt.s32.totalorder %s523_s18, %s523_s18 }
   0xb   :  { %p530_p6 = por %p529_p5, %p528_p4 }
   0xd   :  { %p531_p7 = pnand %p530_p6, %p524_p3 }
   0xf   :  { %534 = shalt.err (!%p531_p7)
}
  0x10   :  { %s562_s19 = smov 128   ;;  %s563_s20 = smov 8  }
  0x11   :  { %20 = dma.hbm_to_vmem [thread:$0]  %s696_s0, 2048, %s15_s10, [#allocation3], %s562_s19, %s562_s19, %s563_s20  }
  0x12   :  { %557 = dma.done.wait [#allocation3], 2048  }
  0x13   :  { %558 = vsyncadd [#allocation3], 4294965248  ;;  %vm42_vm0 = vcmask 130048   ;;  %v34_v0 = vld [vmem:[#allocation2 + $0x40] sm:$0xff]  ;;  %v36_v1 = vld [vmem:[#allocation2 + $0x50] sm:$0xff]  ;;  %s564_s0 = smov 127  }
  0x14   :  { %v38_v2 = vld [vmem:[#allocation2 + $0x60] sm:$0xff]  ;;  %v40_v3 = vld [vmem:[#allocation2 + $0x70] sm:$0xff]  ;;  %v57_v4 = vsel %vm42_vm0, %v34_v0, 0.0  ;;  %v58_v5 = vsel %vm42_vm0, %v36_v1, 0.0  ;;  %v35_v14 = vld [vmem:[#allocation2 + $0x48] sm:$0xff]  ;;  %s565_s23 = smov 15  }
  0x15   :  { %v60_v6 = vsel %vm42_vm0, %v38_v2, 0.0  ;;  %v26_v7 = vld [vmem:[#allocation2] sm:$0xff]  ;;  %v28_v8 = vld [vmem:[#allocation2 + $0x10] sm:$0xff]  ;;  %v59_v9 = vadd.f32 %v58_v5, %v57_v4  ;;  %v62_v15 = vsel %vm42_vm0, %v40_v3, 0.0  ;;  %v37_v18 = vld [vmem:[#allocation2 + $0x58] sm:$0xff]  ;;  %v64_v21 = vsel %vm42_vm0, %v35_v14, 0.0 }
  0x16   :  { %v30_v10 = vld [vmem:[#allocation2 + $0x20] sm:$0xff]  ;;  %v32_v11 = vld [vmem:[#allocation2 + $0x30] sm:$0xff]  ;;  %v43_v12 = vsel %vm42_vm0, %v26_v7, 0.0  ;;  %v44_v13 = vsel %vm42_vm0, %v28_v8, 0.0  ;;  %v39_v19 = vld [vmem:[#allocation2 + $0x68] sm:$0xff]  ;;  %v65_v24 = vsel %vm42_vm0, %v37_v18, 0.0 }
  0x17   :  { %v45_v16 = vadd.f32 %v44_v13, %v43_v12  ;;  %v46_v17 = vsel %vm42_vm0, %v30_v10, 0.0  ;;  %v41_v20 = vld [vmem:[#allocation2 + $0x78] sm:$0xff]  ;;  %v61_v22 = vadd.f32 %v60_v6, %v59_v9  ;;  %v48_v23 = vsel %vm42_vm0, %v32_v11, 0.0  ;;  %v27_v26 = vld [vmem:[#allocation2 + $0x8] sm:$0xff]  ;;  %s566_s24 = smov 126   ;;  %s567_s25 = smov 14  }
  0x18   :  { %v67_v25 = vsel %vm42_vm0, %v39_v19, 0.0  ;;  %v29_v27 = vld [vmem:[#allocation2 + $0x18] sm:$0xff]  ;;  %v31_v28 = vld [vmem:[#allocation2 + $0x28] sm:$0xff]  ;;  %v66_v30 = vadd.f32 %v65_v24, %v64_v21  ;;  %v50_v32 = vsel %vm42_vm0, %v27_v26, 0.0  ;;  %v69_v35 = vsel %vm42_vm0, %v41_v20, 0.0  ;;  %s568_s26 = smov 124  }
  0x19   :  { %v47_v29 = vadd.f32 %v46_v17, %v45_v16  ;;  %v33_v31 = vld [vmem:[#allocation2 + $0x38] sm:$0xff]  ;;  %v51_v33 = vsel %vm42_vm0, %v29_v27, 0.0  ;;  %v63_v34 = vadd.f32 %v62_v15, %v61_v22  ;;  %v53_v37 = vsel %vm42_vm0, %v31_v28, 0.0  ;;  %s569_s27 = smov 12   ;;  %s570_s8 = smov 113  }
  0x1a   :  { %v52_v36 = vadd.f32 %v51_v33, %v50_v32  ;;  %v68_v39 = vadd.f32 %v67_v25, %v66_v30  ;;  %v55_v40 = vsel %vm42_vm0, %v33_v31, 0.0  ;;  %vm112_vm1 = vcmask 121856   ;;  %s571_s9 = smov 1   ;;  %s573_s10 = smov 2  }
  0x1b   :  { %v49_v38 = vadd.f32 %v48_v23, %v47_v29  ;;  %v74_v41 = vmul.f32 0.25, %v63_v34  ;;  %vm149_vm2 = vcmask 113664   ;;  %vm186_vm3 = vcmask 97280   ;;  %s574_s11 = smov 116   ;;  %s575_s12 = smov 4  }
  0x1c   :  { %v54_v42 = vadd.f32 %v53_v37, %v52_v36  ;;  %v70_v44 = vadd.f32 %v69_v35, %v68_v39  ;;  %vm199_vm4 = vcmask 1046528   ;;  %vm221_vm5 = vcmask 1045504   ;;  %s576_s13 = smov [#allocation5]  }
  0x1d   :  { %v72_v43 = vmul.f32 0.25, %v49_v38  ;;  %v80_v45 = vmul.f32 1.442695, %v74_v41  ;;  %vm243_vm6 = vcmask 1043456   ;;  %vm265_vm7 = vcmask 72704   ;;  %s469_s14 = sshll.u32 %s576_s13, 4  ;;  %s470_s14 = int_to_ptr.vmem [resolvable:$true] %s469_s14 }
  0x1e   :  { %v56_v46 = vadd.f32 %v55_v40, %v54_v42  ;;  %v75_v48 = vmul.f32 0.25, %v70_v44  ;;  %vm270_vm8 = vcmask 1040384   ;;  %vm309_vm9 = vcmask 7168   ;;  %s535_s15 = scalar_lea.vmem %s470_s14, 512  ;;  %p540_p9 = scmp.lt.s32.totalorder %s470_s14, %s470_s14 }
  0x1f   :  { %v76_v47 = vmul.f32 1.442695, %v72_v43  ;;  %497 = vpow2.f32 %v80_v45  ;;  %vm346_vm10 = vcmask 15360   ;;  %vm383_vm11 = vcmask 31744   ;;  %p536_p8 = scmp.ne.s32.totalorder %s470_s14, %s535_s15  ;;  %p541_p10 = scmp.lt.s32.totalorder %s535_s15, %s535_s15 }
  0x20   :  { %v73_v49 = vmul.f32 0.25, %v56_v46  ;;  %v82_v50 = vmul.f32 1.442695, %v75_v48  ;;  %vm419_vm12 = vcmask 1041408  }
  0x21   :  { %499 = vpow2.f32 %v76_v47  ;;  %p542_p11 = por %p541_p10, %p540_p9 }
  0x22   :  { %v78_v51 = vmul.f32 1.442695, %v73_v49  ;;  %501 = vpow2.f32 %v82_v50 }
  0x23   :  { %p543_p12 = pnand %p542_p11, %p536_p8 }
  0x24   :  { %503 = vpow2.f32 %v78_v51 }
  0x29   :  { %v623_v52 = vpop.eup %497 }
  0x2a   :  { %92 = vrot.lane.b32.xlu1 %v623_v52, %s564_s0 }
  0x2b   :  { %v625_v53 = vpop.eup %499 }
  0x2c   :  { %88 = vrot.lane.b32.xlu0 %v625_v53, %s564_s0  ;;  %v629_v54 = vpop.eup %501 }
  0x2e   :  { %v631_v55 = vpop.eup %503  ;;  %94 = vrot.lane.b32.xlu1 %v629_v54, %s564_s0 }
  0x30   :  { %90 = vrot.lane.b32.xlu0 %v631_v55, %s564_s0 }
  0x32   :  { %102 = vrot.lane.b32.xlu1 %v631_v55, %s565_s23 }
  0x34   :  { %100 = vrot.lane.b32.xlu0 %v625_v53, %s565_s23 }
  0x36   :  { %106 = vrot.lane.b32.xlu1 %v629_v54, %s565_s23 }
  0x38   :  { %104 = vrot.lane.b32.xlu0 %v623_v52, %s565_s23 }
  0x9c   :  { %v93_v56 = vpop.permute.xlu1 %92 }
  0x9e   :  { %v89_v57 = vpop.permute.xlu0 %88 }
  0xa0   :  { %v95_v58 = vpop.permute.xlu1 %94 }
  0xa2   :  { %v91_v59 = vpop.permute.xlu0 %90 }
  0xa4   :  { %v103_v60 = vpop.permute.xlu1 %102 }
  0xa5   :  { %v114_v61 = vsel %vm112_vm1, %v91_v59, %v103_v60 }
  0xa6   :  { %v101_v62 = vpop.permute.xlu0 %100  ;;  %v118_v63 = vadd.f32 %v631_v55, %v114_v61 }
  0xa7   :  { %v113_v0 = vsel %vm112_vm1, %v89_v57, %v101_v62 }
  0xa8   :  { %v117_v1 = vadd.f32 %v625_v53, %v113_v0  ;;  %v107_v2 = vpop.permute.xlu1 %106  ;;  %127 = vrot.lane.b32.xlu1 %v118_v63, %s566_s24 }
  0xa9   :  { %v116_v3 = vsel %vm112_vm1, %v95_v58, %v107_v2 }
  0xaa   :  { %125 = vrot.lane.b32.xlu0 %v117_v1, %s566_s24  ;;  %v105_v4 = vpop.permute.xlu0 %104  ;;  %v120_v5 = vadd.f32 %v629_v54, %v116_v3 }
  0xab   :  { %v115_v6 = vsel %vm112_vm1, %v93_v56, %v105_v4 }
  0xac   :  { %v119_v7 = vadd.f32 %v623_v52, %v115_v6  ;;  %131 = vrot.lane.b32.xlu1 %v120_v5, %s566_s24 }
  0xae   :  { %129 = vrot.lane.b32.xlu0 %v119_v7, %s566_s24 }
  0xb0   :  { %139 = vrot.lane.b32.xlu1 %v118_v63, %s567_s25 }
  0xb2   :  { %137 = vrot.lane.b32.xlu0 %v117_v1, %s567_s25 }
  0xb4   :  { %143 = vrot.lane.b32.xlu1 %v120_v5, %s567_s25 }
  0xb6   :  { %141 = vrot.lane.b32.xlu0 %v119_v7, %s567_s25 }
 0x11a   :  { %v128_v8 = vpop.permute.xlu1 %127 }
 0x11c   :  { %v126_v9 = vpop.permute.xlu0 %125 }
 0x11e   :  { %v132_v10 = vpop.permute.xlu1 %131 }
 0x120   :  { %v130_v11 = vpop.permute.xlu0 %129 }
 0x122   :  { %v140_v12 = vpop.permute.xlu1 %139 }
 0x123   :  { %v151_v13 = vsel %vm149_vm2, %v128_v8, %v140_v12 }
 0x124   :  { %v138_v14 = vpop.permute.xlu0 %137  ;;  %v155_v15 = vadd.f32 %v151_v13, %v118_v63 }
 0x125   :  { %v150_v16 = vsel %vm149_vm2, %v126_v9, %v138_v14 }
 0x126   :  { %v154_v17 = vadd.f32 %v150_v16, %v117_v1  ;;  %164 = vrot.lane.b32.xlu1 %v155_v15, %s568_s26  ;;  %v144_v18 = vpop.permute.xlu1 %143  ;;  %v262_v16 = vld [vmem:[%s697_s1 + $0x8] sm:$0x1] }
 0x127   :  { %v153_v19 = vsel %vm149_vm2, %v132_v10, %v144_v18  ;;  %v264_v18 = vld [vmem:[%s697_s1 + $0x18] sm:$0x1] }
 0x128   :  { %162 = vrot.lane.b32.xlu0 %v154_v17, %s568_s26  ;;  %v142_v20 = vpop.permute.xlu0 %141  ;;  %v157_v21 = vadd.f32 %v153_v19, %v120_v5  ;;  %v261_v19 = vld [vmem:[%s697_s1] sm:$0xff] }
 0x129   :  { %v152_v22 = vsel %vm149_vm2, %v130_v11, %v142_v20 }
 0x12a   :  { %v156_v23 = vadd.f32 %v152_v22, %v119_v7  ;;  %168 = vrot.lane.b32.xlu1 %v157_v21, %s568_s26 }
 0x12c   :  { %166 = vrot.lane.b32.xlu0 %v156_v23, %s568_s26 }
 0x12e   :  { %176 = vrot.lane.b32.xlu1 %v155_v15, %s569_s27 }
 0x130   :  { %174 = vrot.lane.b32.xlu0 %v154_v17, %s569_s27 }
 0x132   :  { %180 = vrot.lane.b32.xlu1 %v157_v21, %s569_s27 }
 0x134   :  { %178 = vrot.lane.b32.xlu0 %v156_v23, %s569_s27 }
 0x198   :  { %v165_v24 = vpop.permute.xlu1 %164 }
 0x19a   :  { %v163_v25 = vpop.permute.xlu0 %162 }
 0x19c   :  { %v169_v26 = vpop.permute.xlu1 %168 }
 0x19e   :  { %v167_v27 = vpop.permute.xlu0 %166 }
 0x1a0   :  { %v177_v28 = vpop.permute.xlu1 %176 }
 0x1a1   :  { %v188_v29 = vsel %vm186_vm3, %v165_v24, %v177_v28 }
 0x1a2   :  { %v175_v30 = vpop.permute.xlu0 %174  ;;  %v192_v31 = vadd.f32 %v188_v29, %v155_v15 }
 0x1a3   :  { %v187_v32 = vsel %vm186_vm3, %v163_v25, %v175_v30  ;;  %v263_v25 = vld [vmem:[%s697_s1 + $0x10] sm:$0xff]  ;;  %s572_s1 = smov 114  }
 0x1a4   :  { %v191_v33 = vadd.f32 %v187_v32, %v154_v17  ;;  %v201_v34 = vrot.slane %v192_v31, 1  ;;  %v181_v35 = vpop.permute.xlu1 %180  ;;  %v267_v17 = vsel %vm265_vm7, %v262_v16, 0.0 }
 0x1a5   :  { %v190_v37 = vsel %vm186_vm3, %v169_v26, %v181_v35  ;;  %v271_v20 = vsel %vm270_vm8, %v267_v17, 0.0 }
 0x1a6   :  { %v200_v36 = vrot.slane %v191_v33, 1  ;;  %v179_v38 = vpop.permute.xlu0 %178  ;;  %v194_v39 = vadd.f32 %v190_v37, %v157_v21  ;;  %v269_v21 = vsel %vm265_vm7, %v264_v18, 0.0 }
 0x1a7   :  { %v189_v40 = vsel %vm186_vm3, %v167_v27, %v179_v38  ;;  %v272_v27 = vsel %vm270_vm8, %v269_v21, 0.0 }
 0x1a8   :  { %v202_v41 = vsel %vm199_vm4, %v200_v36, %v201_v34  ;;  %v193_v42 = vadd.f32 %v189_v40, %v156_v23  ;;  %v205_v43 = vrot.slane %v194_v39, 1  ;;  %v266_v23 = vsel %vm265_vm7, %v261_v19, 0.0 }
 0x1a9   :  { %v213_v44 = vadd.f32 %v202_v41, %v191_v33 }
 0x1aa   :  { %v203_v45 = vrot.slane %v193_v42, 1  ;;  %v212_v46 = vsel %vm199_vm4, %v205_v43, %v200_v36 }
 0x1ab   :  { %v216_v47 = vadd.f32 %v212_v46, %v194_v39  ;;  %v222_v56 = vrot.slane %v213_v44, 2 }
 0x1ac   :  { %v204_v48 = vsel %vm199_vm4, %v201_v34, %v203_v45  ;;  %v206_v49 = vsel %vm199_vm4, %v203_v45, %v205_v43 }
 0x1ad   :  { %v214_v50 = vadd.f32 %v204_v48, %v192_v31  ;;  %v215_v51 = vadd.f32 %v206_v49, %v193_v42  ;;  %v227_v57 = vrot.slane %v216_v47, 2  ;;  %v268_v31 = vsel %vm265_vm7, %v263_v25, 0.0 }
 0x1af   :  { %v223_v58 = vrot.slane %v214_v50, 2  ;;  %v225_v59 = vrot.slane %v215_v51, 2  ;;  %v234_v60 = vsel %vm221_vm5, %v227_v57, %v222_v56 }
 0x1b0   :  { %v238_v61 = vadd.f32 %v234_v60, %v216_v47 }
 0x1b1   :  { %v224_v62 = vsel %vm221_vm5, %v222_v56, %v223_v58  ;;  %v226_v63 = vsel %vm221_vm5, %v223_v58, %v225_v59  ;;  %v228_v0 = vsel %vm221_vm5, %v225_v59, %v227_v57 }
 0x1b2   :  { %v236_v1 = vadd.f32 %v226_v63, %v214_v50  ;;  %v237_v2 = vadd.f32 %v228_v0, %v215_v51  ;;  %v235_v3 = vadd.f32 %v224_v62, %v213_v44  ;;  %v249_v4 = vrot.slane %v238_v61, 4 }
 0x1b4   :  { %v245_v5 = vrot.slane %v236_v1, 4  ;;  %v247_v6 = vrot.slane %v237_v2, 4  ;;  %v244_v7 = vrot.slane %v235_v3, 4 }
 0x1b6   :  { %v248_v8 = vsel %vm243_vm6, %v245_v5, %v247_v6  ;;  %v250_v9 = vsel %vm243_vm6, %v247_v6, %v249_v4  ;;  %v246_v10 = vsel %vm243_vm6, %v244_v7, %v245_v5  ;;  %v256_v11 = vsel %vm243_vm6, %v249_v4, %v244_v7 }
 0x1b7   :  { %v258_v12 = vadd.f32 %v248_v8, %v236_v1  ;;  %v257_v13 = vadd.f32 %v246_v10, %v235_v3  ;;  %v260_v14 = vadd.f32 %v256_v11, %v238_v61  ;;  %v259_v15 = vadd.f32 %v250_v9, %v237_v2 }
 0x1b9   :  { %505 = vrcp.f32 %v258_v12 }
 0x1ba   :  { %507 = vrcp.f32 %v257_v13 }
 0x1bb   :  { %509 = vrcp.f32 %v260_v14 }
 0x1bc   :  { %511 = vrcp.f32 %v259_v15 }
 0x1c3   :  { %v506_v22 = vpop.eup %505 }
 0x1c4   :  { %v276_v24 = vmul.f32 %v506_v22, %v271_v20  ;;  %v508_v26 = vpop.eup %507 }
 0x1c5   :  { %v510_v28 = vpop.eup %509  ;;  %v274_v29 = vmul.f32 %v508_v26, %v266_v23 }
 0x1c6   :  { %287 = vrot.lane.b32.xlu1 %v276_v24, %s570_s8  ;;  %v512_v30 = vpop.eup %511  ;;  %v280_v32 = vmul.f32 %v510_v28, %v272_v27 }
 0x1c7   :  { %285 = vrot.lane.b32.xlu0 %v274_v29, %s570_s8  ;;  %v278_v33 = vmul.f32 %v512_v30, %v268_v31 }
 0x1ca   :  { %291 = vrot.lane.b32.xlu1 %v280_v32, %s570_s8 }
 0x1cb   :  { %289 = vrot.lane.b32.xlu0 %v278_v33, %s570_s8 }
 0x1ce   :  { %299 = vrot.lane.b32.xlu1 %v276_v24, %s571_s9 }
 0x1cf   :  { %297 = vrot.lane.b32.xlu0 %v274_v29, %s571_s9 }
 0x1d2   :  { %303 = vrot.lane.b32.xlu1 %v280_v32, %s571_s9 }
 0x1d3   :  { %301 = vrot.lane.b32.xlu0 %v278_v33, %s571_s9 }
 0x238   :  { %v288_v34 = vpop.permute.xlu1 %287 }
 0x239   :  { %v286_v35 = vpop.permute.xlu0 %285 }
 0x23c   :  { %v292_v36 = vpop.permute.xlu1 %291 }
 0x23d   :  { %v290_v37 = vpop.permute.xlu0 %289 }
 0x240   :  { %v300_v38 = vpop.permute.xlu1 %299 }
 0x241   :  { %v311_v39 = vsel %vm309_vm9, %v288_v34, %v300_v38  ;;  %v298_v41 = vpop.permute.xlu0 %297 }
 0x242   :  { %v315_v40 = vadd.f32 %v311_v39, %v276_v24  ;;  %v310_v42 = vsel %vm309_vm9, %v286_v35, %v298_v41 }
 0x243   :  { %v314_v43 = vadd.f32 %v310_v42, %v274_v29 }
 0x244   :  { %324 = vrot.lane.b32.xlu1 %v315_v40, %s572_s1  ;;  %v304_v44 = vpop.permute.xlu1 %303 }
 0x245   :  { %v313_v45 = vsel %vm309_vm9, %v292_v36, %v304_v44  ;;  %322 = vrot.lane.b32.xlu0 %v314_v43, %s572_s1  ;;  %v302_v47 = vpop.permute.xlu0 %301 }
 0x246   :  { %v317_v46 = vadd.f32 %v313_v45, %v280_v32  ;;  %v312_v48 = vsel %vm309_vm9, %v290_v37, %v302_v47 }
 0x247   :  { %v316_v49 = vadd.f32 %v312_v48, %v278_v33 }
 0x248   :  { %328 = vrot.lane.b32.xlu1 %v317_v46, %s572_s1 }
 0x249   :  { %326 = vrot.lane.b32.xlu0 %v316_v49, %s572_s1 }
 0x24c   :  { %336 = vrot.lane.b32.xlu1 %v315_v40, %s573_s10 }
 0x24d   :  { %334 = vrot.lane.b32.xlu0 %v314_v43, %s573_s10 }
 0x250   :  { %340 = vrot.lane.b32.xlu1 %v317_v46, %s573_s10 }
 0x251   :  { %338 = vrot.lane.b32.xlu0 %v316_v49, %s573_s10 }
 0x2b6   :  { %v325_v50 = vpop.permute.xlu1 %324 }
 0x2b7   :  { %v323_v51 = vpop.permute.xlu0 %322 }
 0x2ba   :  { %v329_v56 = vpop.permute.xlu1 %328 }
 0x2bb   :  { %v327_v57 = vpop.permute.xlu0 %326 }
 0x2be   :  { %v337_v58 = vpop.permute.xlu1 %336 }
 0x2bf   :  { %v348_v59 = vsel %vm346_vm10, %v325_v50, %v337_v58  ;;  %v335_v61 = vpop.permute.xlu0 %334 }
 0x2c0   :  { %v352_v60 = vadd.f32 %v348_v59, %v315_v40  ;;  %v347_v62 = vsel %vm346_vm10, %v323_v51, %v335_v61 }
 0x2c1   :  { %v351_v63 = vadd.f32 %v347_v62, %v314_v43 }
 0x2c2   :  { %361 = vrot.lane.b32.xlu1 %v352_v60, %s574_s11  ;;  %v341_v0 = vpop.permute.xlu1 %340 }
 0x2c3   :  { %v350_v1 = vsel %vm346_vm10, %v329_v56, %v341_v0  ;;  %359 = vrot.lane.b32.xlu0 %v351_v63, %s574_s11  ;;  %v339_v3 = vpop.permute.xlu0 %338 }
 0x2c4   :  { %v354_v2 = vadd.f32 %v350_v1, %v317_v46  ;;  %v349_v4 = vsel %vm346_vm10, %v327_v57, %v339_v3 }
 0x2c5   :  { %v353_v5 = vadd.f32 %v349_v4, %v316_v49 }
 0x2c6   :  { %365 = vrot.lane.b32.xlu1 %v354_v2, %s574_s11 }
 0x2c7   :  { %363 = vrot.lane.b32.xlu0 %v353_v5, %s574_s11 }
 0x2ca   :  { %373 = vrot.lane.b32.xlu1 %v352_v60, %s575_s12 }
 0x2cb   :  { %371 = vrot.lane.b32.xlu0 %v351_v63, %s575_s12 }
 0x2ce   :  { %377 = vrot.lane.b32.xlu1 %v354_v2, %s575_s12 }
 0x2cf   :  { %375 = vrot.lane.b32.xlu0 %v353_v5, %s575_s12 }
 0x334   :  { %v362_v6 = vpop.permute.xlu1 %361 }
 0x335   :  { %v360_v7 = vpop.permute.xlu0 %359 }
 0x338   :  { %v366_v8 = vpop.permute.xlu1 %365 }
 0x339   :  { %v364_v9 = vpop.permute.xlu0 %363 }
 0x33c   :  { %v374_v10 = vpop.permute.xlu1 %373 }
 0x33d   :  { %v385_v11 = vsel %vm383_vm11, %v362_v6, %v374_v10  ;;  %v372_v13 = vpop.permute.xlu0 %371 }
 0x33e   :  { %v389_v12 = vadd.f32 %v385_v11, %v352_v60  ;;  %v384_v14 = vsel %vm383_vm11, %v360_v7, %v372_v13 }
 0x33f   :  { %v388_v16 = vadd.f32 %v384_v14, %v351_v63 }
 0x340   :  { %v399_v15 = vrot.slane %v389_v12, 7  ;;  %v378_v17 = vpop.permute.xlu1 %377 }
 0x341   :  { %v387_v18 = vsel %vm383_vm11, %v366_v8, %v378_v17  ;;  %v398_v19 = vrot.slane %v388_v16, 7  ;;  %v376_v21 = vpop.permute.xlu0 %375 }
 0x342   :  { %v391_v20 = vadd.f32 %v387_v18, %v354_v2  ;;  %v386_v22 = vsel %vm383_vm11, %v364_v9, %v376_v21 }
 0x343   :  { %v400_v23 = vsel %vm270_vm8, %v398_v19, %v399_v15  ;;  %v390_v25 = vadd.f32 %v386_v22, %v353_v5 }
 0x344   :  { %v393_v24 = vrot.slane %v391_v20, 7  ;;  %v410_v26 = vadd.f32 %v400_v23, %v389_v12 }
 0x345   :  { %v401_v28 = vrot.slane %v390_v25, 7 }
 0x346   :  { %v408_v27 = vsel %vm270_vm8, %v393_v24, %v398_v19  ;;  %v421_v33 = vrot.slane %v410_v26, 6 }
 0x347   :  { %v409_v29 = vadd.f32 %v408_v27, %v388_v16  ;;  %v402_v30 = vsel %vm270_vm8, %v399_v15, %v401_v28  ;;  %v403_v31 = vsel %vm270_vm8, %v401_v28, %v393_v24 }
 0x348   :  { %v411_v34 = vadd.f32 %v402_v30, %v390_v25  ;;  %v412_v35 = vadd.f32 %v403_v31, %v391_v20 }
 0x349   :  { %v420_v32 = vrot.slane %v409_v29, 6 }
 0x34a   :  { %v414_v37 = vrot.slane %v412_v35, 6  ;;  %v423_v38 = vrot.slane %v411_v34, 6 }
 0x34b   :  { %v422_v36 = vsel %vm419_vm12, %v420_v32, %v421_v33 }
 0x34c   :  { %v432_v39 = vadd.f32 %v422_v36, %v410_v26  ;;  %v424_v40 = vsel %vm419_vm12, %v421_v33, %v423_v38  ;;  %v425_v41 = vsel %vm419_vm12, %v423_v38, %v414_v37  ;;  %v430_v42 = vsel %vm419_vm12, %v414_v37, %v420_v32 }
 0x34d   :  { %v431_v44 = vadd.f32 %v430_v42, %v409_v29  ;;  %v433_v45 = vadd.f32 %v424_v40, %v411_v34  ;;  %v434_v46 = vadd.f32 %v425_v41, %v412_v35 }
 0x34e   :  { %v442_v43 = vrot.slane %v432_v39, 4 }
 0x34f   :  { %v436_v47 = vrot.slane %v434_v46, 4  ;;  %v441_v48 = vrot.slane %v431_v44, 4  ;;  %v444_v49 = vrot.slane %v433_v45, 4 }
 0x351   :  { %v445_v50 = vsel %vm243_vm6, %v442_v43, %v444_v49  ;;  %v446_v51 = vsel %vm243_vm6, %v444_v49, %v436_v47  ;;  %v443_v56 = vsel %vm243_vm6, %v441_v48, %v442_v43  ;;  %v451_v57 = vsel %vm243_vm6, %v436_v47, %v441_v48 }
 0x352   :  { %v454_v58 = vadd.f32 %v445_v50, %v433_v45  ;;  %v455_v59 = vadd.f32 %v446_v51, %v434_v46  ;;  %v452_v60 = vadd.f32 %v451_v57, %v431_v44  ;;  %v453_v61 = vadd.f32 %v443_v56, %v432_v39 }
 0x354   :  { %v458_v62 = vmul.f32 %v623_v52, %v454_v58  ;;  %v456_v63 = vmul.f32 %v625_v53, %v452_v60  ;;  %v457_v0 = vmul.f32 %v631_v55, %v453_v61  ;;  %v459_v1 = vmul.f32 %v629_v54, %v455_v59 }
 0x356   :  { %462 = vst.msk [vmem:[#allocation5 + $0x10] sm:$0xff] %vm42_vm0, %v458_v62  ;;  %460 = vst.msk [vmem:[#allocation5] sm:$0xff] %vm42_vm0, %v456_v63 }
 0x357   :  { %461 = vst.msk [vmem:[#allocation5 + $0x8] sm:$0xff] %vm42_vm0, %v457_v0  ;;  %463 = vst.msk [vmem:[#allocation5 + $0x18] sm:$0xff] %vm42_vm0, %v459_v1 }
 0x358   :  { %546 = shalt.err (!%p543_p12)
}
 0x359   :  { %s547_s18 = scalar_lea.hbm %s698_s2, 512 }
 0x35a   :  { %p548_p13 = scmp.ne.s32.totalorder %s698_s2, %s547_s18  ;;  %p551_p0 = scmp.lt.u32.totalorder %s547_s18, %s698_s2 }
 0x35c   :  { %p553_p1 = pnand %p551_p0, %p548_p13 }
 0x35e   :  { %556 = shalt.err (!%p553_p1)
}
 0x35f   :  { %475 = dma.vmem_to_hbm [thread:$0]  %s470_s14, 512, %s698_s2, [#allocation4], %s562_s19, %s562_s19, %s563_s20  }
 0x360   :  { %559 = dma.done.wait [#allocation4], 512  }
 0x361   :  { %560 = vsyncadd [#allocation4], 4294966784 }
 0x362   :  { %479 = vsyncpa [#allocation3], 1 }
 0x363   :  { %480 = vsyncpa [#allocation4], 1 }

</bundles_post_ra>
